<compile_context>
chip_gen: v6e
topology: v6e:2x2x1
jax: 0.10.0
libtpu: 0.0.40
codegen_flags: <defaults>
</compile_context>

<pallas_src>
import functools

import jax
import jax.numpy as jnp
from jax.experimental import pallas as pl
from jax.experimental.pallas import tpu as pltpu


def _round_up(x, m):
    return (x + m - 1) // m * m


# ----------------------------- Pallas kernels ------------------------------

def _fused_matmul_kernel(a_ref, b_ref, s_ref, c_ref, o_ref, acc_ref, *, relu):
    """Tiled matmul with K-reduction + fused BatchNorm(scale/bias) (+ReLU) epilogue."""
    kk = pl.program_id(1)

    @pl.when(kk == 0)
    def _():
        acc_ref[...] = jnp.zeros_like(acc_ref)

    acc_ref[...] += jnp.dot(a_ref[...], b_ref[...],
                            preferred_element_type=jnp.float32)

    @pl.when(kk == pl.num_programs(1) - 1)
    def _():
        y = acc_ref[...] * s_ref[...] + c_ref[...]
        if relu:
            y = jnp.maximum(y, 0.0)
        o_ref[...] = y.astype(o_ref.dtype)


def _fused_matmul_cls_kernel(a_ref, b_ref, s_ref, c_ref, wc_ref, bc_ref,
                             o_ref, acc_ref):
    """Same as above, plus a fused 1x1 classifier applied to the BN+ReLU'd tile."""
    kk = pl.program_id(1)

    @pl.when(kk == 0)
    def _():
        acc_ref[...] = jnp.zeros_like(acc_ref)

    acc_ref[...] += jnp.dot(a_ref[...], b_ref[...],
                            preferred_element_type=jnp.float32)

    @pl.when(kk == pl.num_programs(1) - 1)
    def _():
        h = jnp.maximum(acc_ref[...] * s_ref[...] + c_ref[...], 0.0)   # (TM, Npad)
        o_ref[...] = (jnp.dot(h.astype(jnp.bfloat16), wc_ref[...],
                              preferred_element_type=jnp.float32)
                      + bc_ref[...]).astype(o_ref.dtype)


def _spatial_softmax_kernel(logits_ref, cw_ref, ch_ref, points_ref, weights_ref,
                            *, inv_temperature):
    # logits_ref: (TB, H*W) — softmax reduction and stores are lane-axis only.
    z = logits_ref[...].astype(jnp.float32) * inv_temperature
    m = jnp.max(z, axis=-1, keepdims=True)
    p = jnp.exp(z - m)
    s = jnp.sum(p, axis=-1, keepdims=True)
    w = p / s                                              # exact (keeps sum==1)
    weights_ref[...] = w
    x = jnp.sum(w * cw_ref[...], axis=-1, keepdims=True)   # (TB, 1)
    y = jnp.sum(w * ch_ref[...], axis=-1, keepdims=True)   # (TB, 1)
    points_ref[...] = jnp.concatenate([x, y], axis=-1)     # (TB, 2)


# ------------------------------ Pallas wrappers ------------------------------

_MOSAIC_MM = dict(vmem_limit_bytes=64 * 1024 * 1024)   # safe on v7x's 64 MiB VMEM


def _pad_operands(a, b, scale, bias, tm, tk):
    m, k = a.shape
    _, nc = b.shape
    n_pad = _round_up(max(nc, 128), 128)            # lane-dense output
    k_pad = _round_up(k, tk)
    tm = min(tm, _round_up(m, 8))
    m_pad = _round_up(m, tm)
    a_p = jnp.pad(a.astype(jnp.bfloat16), ((0, m_pad - m), (0, k_pad - k)))
    b_p = jnp.pad(b.astype(jnp.bfloat16), ((0, k_pad - k), (0, n_pad - nc)))
    s_p = jnp.pad(scale.astype(jnp.float32), (0, n_pad - nc),
                  constant_values=1.0).reshape(1, n_pad)
    c_p = jnp.pad(bias.astype(jnp.float32), (0, n_pad - nc)).reshape(1, n_pad)
    return a_p, b_p, s_p, c_p, m, nc, m_pad, k_pad, n_pad, tm


def fused_conv_matmul(a, b, scale, bias, *, relu, out_dtype=jnp.float32,
                      tm=512, tk=128):
    """(M, K) @ (K, Nc) with fused per-channel scale/bias (+ReLU).  bf16 MXU, f32 acc."""
    a_p, b_p, s_p, c_p, m, nc, m_pad, k_pad, n_pad, tm = _pad_operands(
        a, b, scale, bias, tm, tk)
    grid = (m_pad // tm, k_pad // tk)
    out = pl.pallas_call(
        functools.partial(_fused_matmul_kernel, relu=relu),
        out_shape=jax.ShapeDtypeStruct((m_pad, n_pad), out_dtype),
        grid=grid,
        in_specs=[pl.BlockSpec((tm, tk), lambda i, kk: (i, kk)),
                  pl.BlockSpec((tk, n_pad), lambda i, kk: (kk, 0)),
                  pl.BlockSpec((1, n_pad), lambda i, kk: (0, 0)),
                  pl.BlockSpec((1, n_pad), lambda i, kk: (0, 0))],
        out_specs=pl.BlockSpec((tm, n_pad), lambda i, kk: (i, 0)),
        scratch_shapes=[pltpu.VMEM((tm, n_pad), jnp.float32)],
        compiler_params=pltpu.CompilerParams(
            dimension_semantics=("parallel", "arbitrary"), **_MOSAIC_MM),
    )(a_p, b_p, s_p, c_p)
    return out[:m, :nc]


def fused_conv_matmul_cls(a, b, scale, bias, w_cls, b_cls, *, tm=512, tk=128):
    """Conv matmul + BN + ReLU, then a fused 1x1 classifier in the epilogue."""
    a_p, b_p, s_p, c_p, m, nc, m_pad, k_pad, n_pad, tm = _pad_operands(
        a, b, scale, bias, tm, tk)
    ncls = w_cls.shape[1]
    ncls_pad = _round_up(max(ncls, 128), 128)
    wc_p = jnp.pad(w_cls.astype(jnp.bfloat16), ((0, n_pad - nc), (0, ncls_pad - ncls)))
    bc_p = jnp.pad(b_cls.astype(jnp.float32), (0, ncls_pad - ncls)).reshape(1, ncls_pad)
    grid = (m_pad // tm, k_pad // tk)
    out = pl.pallas_call(
        _fused_matmul_cls_kernel,
        out_shape=jax.ShapeDtypeStruct((m_pad, ncls_pad), jnp.float32),
        grid=grid,
        in_specs=[pl.BlockSpec((tm, tk), lambda i, kk: (i, kk)),
                  pl.BlockSpec((tk, n_pad), lambda i, kk: (kk, 0)),
                  pl.BlockSpec((1, n_pad), lambda i, kk: (0, 0)),
                  pl.BlockSpec((1, n_pad), lambda i, kk: (0, 0)),
                  pl.BlockSpec((n_pad, ncls_pad), lambda i, kk: (0, 0)),
                  pl.BlockSpec((1, ncls_pad), lambda i, kk: (0, 0))],
        out_specs=pl.BlockSpec((tm, ncls_pad), lambda i, kk: (i, 0)),
        scratch_shapes=[pltpu.VMEM((tm, n_pad), jnp.float32)],
        compiler_params=pltpu.CompilerParams(
            dimension_semantics=("parallel", "arbitrary"), **_MOSAIC_MM),
    )(a_p, b_p, s_p, c_p, wc_p, bc_p)
    return out[:m, :ncls]


def pallas_spatial_softmax(logits_nchw, temperature):
    n, c, h, w = logits_nchw.shape
    b = n * c
    hw = h * w
    flat = logits_nchw.reshape(b, hw).astype(jnp.float32)        # lane-dense view
    cw = jnp.tile(jnp.linspace(-1.0, 1.0, w, dtype=jnp.float32), (h,)).reshape(1, hw)
    ch = jnp.repeat(jnp.linspace(-1.0, 1.0, h, dtype=jnp.float32), w).reshape(1, hw)
    tb = 8 if (b % 8 == 0) else b
    points, weights = pl.pallas_call(
        functools.partial(_spatial_softmax_kernel,
                          inv_temperature=1.0 / float(temperature)),
        out_shape=(jax.ShapeDtypeStruct((b, 2), jnp.float32),
                   jax.ShapeDtypeStruct((b, hw), jnp.float32)),
        grid=(b // tb,),
        in_specs=[pl.BlockSpec((tb, hw), lambda i: (i, 0)),
                  pl.BlockSpec((1, hw), lambda i: (0, 0)),
                  pl.BlockSpec((1, hw), lambda i: (0, 0))],
        out_specs=(pl.BlockSpec((tb, 2), lambda i: (i, 0)),
                   pl.BlockSpec((tb, hw), lambda i: (i, 0))),
        compiler_params=pltpu.CompilerParams(
            dimension_semantics=("parallel",),
            vmem_limit_bytes=64 * 1024 * 1024),
    )(flat, cw, ch)
    return points.reshape(n, c, 2), weights.reshape(n, c, h, w)


# ------------------------------ conv glue (im2col) ---------------------------

def _im2col(x_nhwc, kh, kw, stride, pad):
    """Patch extraction glue (bf16).  TODO(synk): stream shifted slabs instead."""
    x = jnp.pad(x_nhwc, ((0, 0), (pad, pad), (pad, pad), (0, 0)))
    n, hp, wp, cin = x.shape
    oh = (hp - kh) // stride + 1
    ow = (wp - kw) // stride + 1
    cols = []
    for i in range(kh):
        for j in range(kw):
            cols.append(x[:, i:i + stride * oh:stride, j:j + stride * ow:stride, :])
    patches = jnp.concatenate(cols, axis=-1).reshape(n * oh * ow, kh * kw * cin)
    return patches, oh, ow


def _default_bn(c):
    # PyTorch BatchNorm2d default init / running stats (deterministic, eval mode).
    return dict(gamma=jnp.ones((c,), jnp.float32), beta=jnp.zeros((c,), jnp.float32),
                mean=jnp.zeros((c,), jnp.float32), var=jnp.ones((c,), jnp.float32))


def _bn_fold(bn, eps=1e-5):
    scale = bn["gamma"] / jnp.sqrt(bn["var"] + eps)
    bias = bn["beta"] - bn["mean"] * scale
    return scale, bias


# ------------------------------- the model ----------------------------------

class SegmentationModelPallas:
    """Mirrors SegmentationModel(input_channels, n_steps, batch_norm=True,
    hack=False, extract=False).forward(input, temperature=10)."""

    def __init__(self, input_channels=3, n_steps=4, key=jax.random.PRNGKey(0)):
        self.n_steps = n_steps
        self.input_channels = input_channels
        k1, k2, k3 = jax.random.split(key, 3)
        self.in_bn = _default_bn(input_channels)                 # self.norm
        # stand-in for deeplabv3_resnet50 (see TODO(synk) header note):
        self.conv1_w = 0.05 * jax.random.normal(k1, (7, 7, input_channels, 64), jnp.float32)
        self.bn1 = _default_bn(64)
        self.conv2_w = 0.05 * jax.random.normal(k2, (3, 3, 64, 64), jnp.float32)
        self.bn2 = _default_bn(64)
        self.cls_w = 0.05 * jax.random.normal(k3, (64, n_steps), jnp.float32)  # 1x1 head
        self.cls_b = jnp.zeros((n_steps,), jnp.float32)

    def __call__(self, x_nchw, temperature=10.0):
        n, _, h, w = x_nchw.shape
        x = jnp.transpose(x_nchw, (0, 2, 3, 1))                  # NCHW -> NHWC

        # ---- fold the eval-mode input BatchNorm into conv1 ----
        s_in, b_in = _bn_fold(self.in_bn)
        w1 = self.conv1_w * s_in.reshape(1, 1, -1, 1)
        # exact here because b_in == 0 with default running stats (zero padding caveat)
        conv1_bias = jnp.einsum("ijco,c->o", self.conv1_w, b_in)

        # ---- conv1 (7x7, stride 2, pad 3) + BN1 + ReLU fused into one kernel ----
        s1, b1 = _bn_fold(self.bn1)
        b1 = b1 + conv1_bias * s1
        patches1, oh1, ow1 = _im2col(x.astype(jnp.bfloat16), 7, 7, stride=2, pad=3)
        h1 = fused_conv_matmul(patches1, w1.reshape(-1, 64), s1, b1,
                               relu=True, out_dtype=jnp.bfloat16)
        h1 = h1.reshape(n, oh1, ow1, 64)

        # ---- conv2 (3x3, s1, p1) + BN2 + ReLU + 1x1 classifier fused ----
        s2, b2 = _bn_fold(self.bn2)
        patches2, oh2, ow2 = _im2col(h1, 3, 3, stride=1, pad=1)
        y = fused_conv_matmul_cls(patches2, self.conv2_w.reshape(-1, 64), s2, b2,
                                  self.cls_w, self.cls_b)
        y = y.reshape(n, oh2, ow2, self.n_steps)

        # ---- bilinear upsample back to input resolution (channels-first glue) ----
        y = jnp.transpose(y, (0, 3, 1, 2)).reshape(n * self.n_steps, oh2, ow2)
        y = jax.image.resize(y, (n * self.n_steps, h, w), method="bilinear")
        logits = y.reshape(n, self.n_steps, h, w)

        # ---- spatial softmax (Pallas, lane-dense (B, H*W) view) ----
        points, weights = pallas_spatial_softmax(logits, temperature)
        return points, logits, weights


# --------------------------------- main --------------------------------------

if __name__ == "__main__":
    key = jax.random.PRNGKey(0)
    kx, kp = jax.random.split(key)
    x = jax.random.normal(kx, (2, 3, 16, 16), jnp.float32)   # (N, C_in, H, W)

    model = SegmentationModelPallas(input_channels=3, n_steps=4, key=kp)
    points, logits, weights = model(x, temperature=10.0)
    jax.block_until_ready((points, logits, weights))

    assert points.shape == (2, 4, 2)
    assert logits.shape == (2, 4, 16, 16)
    assert weights.shape == (2, 4, 16, 16)
    # spatial-softmax weights must sum to 1 over (H, W) per (n, c)
    assert bool(jnp.allclose(weights.sum(axis=(-2, -1)), 1.0, atol=1e-4))
    # points are expectations over linspace(-1, 1) -> bounded
    assert bool(jnp.all(jnp.abs(points) <= 1.0 + 1e-5))

    print("KERNEL_OK")
</pallas_src>

<mosaic_0001>
module attributes {stable_mosaic.version = 11 : i64} {
  func.func @_fused_matmul_kernel(%arg0: i32, %arg1: i32, %arg2: memref<128x128xbf16, #tpu.memory_space<vmem>>, %arg3: memref<128x128xbf16, #tpu.memory_space<vmem>>, %arg4: memref<1x128xf32, #tpu.memory_space<vmem>>, %arg5: memref<1x128xf32, #tpu.memory_space<vmem>>, %arg6: memref<128x128xbf16, #tpu.memory_space<vmem>>, %arg7: memref<128x128xf32, #tpu.memory_space<vmem>>) attributes {dimension_semantics = [#tpu.dimension_semantics<parallel>, #tpu.dimension_semantics<arbitrary>], iteration_bounds = array<i64: 1, 2>, scalar_prefetch = 0 : i64, scratch_operands = 1 : i64, tpu.core_type = #tpu.core_type<tc>, window_params = [{transform_indices = @transform_0, window_bounds = array<i64: 128, 128>}, {transform_indices = @transform_1, window_bounds = array<i64: 128, 128>}, {pipeline_mode = #tpu.pipeline_mode<synchronous>, transform_indices = @transform_2, window_bounds = array<i64: 1, 128>}, {pipeline_mode = #tpu.pipeline_mode<synchronous>, transform_indices = @transform_3, window_bounds = array<i64: 1, 128>}, {transform_indices = @transform_4, window_bounds = array<i64: 128, 128>}]} {
    %c0_i32 = arith.constant 0 : i32
    %0 = arith.cmpi eq, %arg1, %c0_i32 : i32
    %1 = arith.extui %0 : i1 to i32
    %c0_i32_0 = arith.constant 0 : i32
    %2 = arith.cmpi ne, %1, %c0_i32_0 : i32
    scf.if %2 {
      %cst_9 = arith.constant 0.000000e+00 : f32
      %12 = vector.broadcast %cst_9 : f32 to vector<128x128xf32>
      %c0_10 = arith.constant 0 : index
      %c0_11 = arith.constant 0 : index
      %13 = vector.load %arg7[%c0_10, %c0_11] : memref<128x128xf32, #tpu.memory_space<vmem>>, vector<128x128xf32>
      tpu.vector_store %arg7[%c0_10, %c0_11], %12 {strides = array<i32>} : memref<128x128xf32, #tpu.memory_space<vmem>>, vector<128x128xf32>,
    } else {
    }
    %c0 = arith.constant 0 : index
    %c0_1 = arith.constant 0 : index
    %3 = vector.load %arg7[%c0, %c0_1] : memref<128x128xf32, #tpu.memory_space<vmem>>, vector<128x128xf32>
    %c0_2 = arith.constant 0 : index
    %c0_3 = arith.constant 0 : index
    %4 = vector.load %arg2[%c0_2, %c0_3] : memref<128x128xbf16, #tpu.memory_space<vmem>>, vector<128x128xbf16>
    %c0_4 = arith.constant 0 : index
    %c0_5 = arith.constant 0 : index
    %5 = vector.load %arg3[%c0_4, %c0_5] : memref<128x128xbf16, #tpu.memory_space<vmem>>, vector<128x128xbf16>
    %cst = arith.constant dense<0.000000e+00> : vector<128x128xf32>
    %6 = tpu.matmul %4, %5, %cst {dimension_numbers = #tpu.dot_dimension_numbers<[1], [0], [0], [1], [0, 0, 1, 1], [], []>} : vector<128x128xbf16>, vector<128x128xbf16>, vector<128x128xf32> -> vector<128x128xf32>
    %7 = arith.addf %3, %6 : vector<128x128xf32>
    %c0_6 = arith.constant 0 : index
    %c0_7 = arith.constant 0 : index
    %8 = vector.load %arg7[%c0_6, %c0_7] : memref<128x128xf32, #tpu.memory_space<vmem>>, vector<128x128xf32>
    tpu.vector_store %arg7[%c0_6, %c0_7], %7 {strides = array<i32>} : memref<128x128xf32, #tpu.memory_space<vmem>>, vector<128x128xf32>,
    %c1_i32 = arith.constant 1 : i32
    %9 = arith.cmpi eq, %arg1, %c1_i32 : i32
    %10 = arith.extui %9 : i1 to i32
    %c0_i32_8 = arith.constant 0 : i32
    %11 = arith.cmpi ne, %10, %c0_i32_8 : i32
    scf.if %11 {
      %c0_9 = arith.constant 0 : index
      %c0_10 = arith.constant 0 : index
      %12 = vector.load %arg7[%c0_9, %c0_10] : memref<128x128xf32, #tpu.memory_space<vmem>>, vector<128x128xf32>
      %c0_11 = arith.constant 0 : index
      %c0_12 = arith.constant 0 : index
      %13 = vector.load %arg4[%c0_11, %c0_12] : memref<1x128xf32, #tpu.memory_space<vmem>>, vector<1x128xf32>
      %14 = vector.broadcast %13 : vector<1x128xf32> to vector<128x128xf32>
      %15 = arith.mulf %12, %14 : vector<128x128xf32>
      %c0_13 = arith.constant 0 : index
      %c0_14 = arith.constant 0 : index
      %16 = vector.load %arg5[%c0_13, %c0_14] : memref<1x128xf32, #tpu.memory_space<vmem>>, vector<1x128xf32>
      %17 = vector.broadcast %16 : vector<1x128xf32> to vector<128x128xf32>
      %18 = arith.addf %15, %17 : vector<128x128xf32>
      %cst_15 = arith.constant 0.000000e+00 : f32
      %19 = vector.broadcast %cst_15 : f32 to vector<128x128xf32>
      %20 = arith.maximumf %18, %19 : vector<128x128xf32>
      %21 = arith.truncf %20 : vector<128x128xf32> to vector<128x128xbf16>
      %c0_16 = arith.constant 0 : index
      %c0_17 = arith.constant 0 : index
      %22 = vector.load %arg6[%c0_16, %c0_17] : memref<128x128xbf16, #tpu.memory_space<vmem>>, vector<128x128xbf16>
      tpu.vector_store %arg6[%c0_16, %c0_17], %21 {strides = array<i32>} : memref<128x128xbf16, #tpu.memory_space<vmem>>, vector<128x128xbf16>,
    } else {
    }
    return
  }
  func.func @transform_0(%arg0: i32, %arg1: i32) -> (i32, i32) {
    %c0_i32 = arith.constant 0 : i32
    return %arg0, %arg1 : i32, i32
  }
  func.func @transform_1(%arg0: i32, %arg1: i32) -> (i32, i32) {
    %c0_i32 = arith.constant 0 : i32
    %c0_i32_0 = arith.constant 0 : i32
    return %arg1, %c0_i32 : i32, i32
  }
  func.func @transform_2(%arg0: i32, %arg1: i32) -> (i32, i32) {
    %c0_i32 = arith.constant 0 : i32
    %c0_i32_0 = arith.constant 0 : i32
    %c0_i32_1 = arith.constant 0 : i32
    return %c0_i32, %c0_i32_0 : i32, i32
  }
  func.func @transform_3(%arg0: i32, %arg1: i32) -> (i32, i32) {
    %c0_i32 = arith.constant 0 : i32
    %c0_i32_0 = arith.constant 0 : i32
    %c0_i32_1 = arith.constant 0 : i32
    return %c0_i32, %c0_i32_0 : i32, i32
  }
  func.func @transform_4(%arg0: i32, %arg1: i32) -> (i32, i32) {
    %c0_i32 = arith.constant 0 : i32
    %c0_i32_0 = arith.constant 0 : i32
    return %arg0, %c0_i32 : i32, i32
  }
}

</mosaic_0001>

<bundles_post_ra>
// kernel: tpu_custom_call.1
= control target key start
LH: loop header
LB: loop body
LE: loop exit
PB: predicated region body
PF: predicated region fallthrough
CT: control target
= control target key end

     0   :  { %9 = vsyncpa [#allocation4], 0  ;;  %s1471_s0 = inlined_call_operand.hbm [shape: bf16[128,256], index: 0, kind: input, shape index: {}]   ;;  %s1472_s1 = inlined_call_operand.hbm [shape: bf16[256,128], index: 1, kind: input, shape index: {}]   ;;  %s1473_s2 = inlined_call_operand.vmem [shape: f32[1,128], index: 2, kind: input, shape index: {}]   ;;  %s1474_s3 = inlined_call_operand.vmem [shape: f32[1,128], index: 3, kind: input, shape index: {}]   ;;  %s1475_s4 = inlined_call_operand.hbm [shape: bf16[128,128], index: 4, kind: output, shape index: {}]  }
   0x1   :  { %11 = vsyncpa [#allocation4 + $0x1], 0 }
   0x2   :  { %12 = vsyncpa [#allocation7], 0 }
   0x3   :  { %14 = vsyncpa [#allocation7 + $0x1], 0 }
   0x4   :  { %15 = vsyncpa [#allocation5], 0  ;;  %s1264_s15 = smov 0   ;;  %s1266_s16 = smov 0  }
   0x5   :  { %s1268_s17 = smov 0   ;;  %s1270_s18 = smov 0  }
   0x6   :  { %s1272_s19 = smov 0   ;;  %s1274_s20 = smov 0  }
   0x7 LB: > { %s1476_s21 = sadd.s32 4294967295, %s1228_s20   ;;  %s30_s22 = sadd.s32 1, %s1224_s19  ;;  %s1228_s20 = sphi %s1274_s20, %s21_s20   ;;  %s1224_s19 = sphi %s1272_s19, %s1487_s19   ;;  %s1220_s18 = sphi %s1270_s18, %s1486_s18   ;;  %s1216_s17 = sphi %s1268_s17, %s1485_s17   ;;  %s1212_s16 = sphi %s1266_s16, %s1484_s16   ;;  %s1208_s15 = sphi %s1264_s15, %s1483_s15  }
   0x8   : > { %p31_p0 = scmp.ge.s32.totalorder %s30_s22, 2  ;;  %s42_s23 = sadd.s32 1, %s1216_s17 }
   0x9   : > { %p49_p1 = scmp.ne.s32.totalorder %s1216_s17, %s1212_s16  ;;  %p50_p2 = scmp.eq.s32.totalorder %s1228_s20, 0 }
   0xa   : > { %s1489_s22 = smov (%p31_p0, %s30_s22), 0  ;;  %p55_p4 = scmp.ne.s32.totalorder %s1212_s16, %s1208_s15 }
   0xb   : > { %p1300_p3 = por %p50_p2, %p49_p1  ;;  %s38_s25 = ssub.s32 %s1224_s19, %s1489_s22 }
   0xc   : > { %p56_p5 = scmp.eq.s32.totalorder %s1476_s21, 0  ;;  %p40_p6 = scmp.eq.s32.totalorder %s38_s25, 0 }
   0xd   : > { %p1016_p8 = scmp.lt.s32.totalorder %s1228_s20, 2  ;;  %s1318_s28 = sand.u32 1, %s1216_s17  }
   0xe   : > { %p1309_p7 = por %p56_p5, %p55_p4  ;;  %s826_s29 = sshll.u32 %s1224_s19, 6 }
   0xf   : > { %s1315_s27 = scalar_select %p40_p6, %s1216_s17, %s42_s23  }
  0x10   : > { %s825_s30 = sshll.u32 %s1318_s28, 6  ;;  %s191_s7 = scalar_lea.hbm %s1471_s0, %s826_s29 }
  0x11   : > { %s183_s8 = scalar_lea.vmem [#allocation3], %s825_s30  ;;  %p1329_p9 = pnand %p1016_p8, %p1300_p3 }
  0x12   : > { %s192_s9 = sshll.u32 %s183_s8, 4  ;;  %p830_p10 = scmp.ge.s32.totalorder %s1228_s20, 1  ;;  %s193_s9 = int_to_ptr.vmem [resolvable:$true] %s192_s9 }
  0x13   : > { %s180_s11 = scalar_lea.sflag [#allocation4], %s1318_s28  ;;  %p1092_p11 = pneg %p1329_p9 }
  0x14   : > { %s1103_s12 = scalar_lea.vmem %s193_s9, 1024  ;;  %s1230_s13 = smov [#allocation3]  }
  0x15   : > { %p1104_p12 = scmp.ne.s32.totalorder %s193_s9, %s1103_s12  ;;  %s1108_s14 = sshll.u32 %s1230_s13, 4  ;;  %s1109_s14 = int_to_ptr.vmem [resolvable:$false] %s1108_s14 }
  0x16   : > { %s1110_s15 = scalar_lea.vmem %s1109_s14, 2048  ;;  %p1111_p1 = scmp.lt.s32.totalorder %s193_s9, %s1109_s14 }
  0x17   : > { %p1106_p13 = pnand %p1104_p12, %p1092_p11  ;;  %p1112_p2 = scmp.lt.s32.totalorder %s1110_s15, %s1103_s12 }
  0x19   : > { %p1107_p0 = pneg %p1106_p13  ;;  %p1113_p3 = por %p1112_p2, %p1111_p1 }
  0x1b   : > { %p1114_p4 = pnand %p1113_p3, %p1107_p0 }
  0x1d   : > { %1117 = shalt.err (!%p1114_p4)
}
  0x1e   : > { %s1231_s23 = smov 128   ;;  %s1232_s24 = smov 64  }
  0x1f   : > { %s1233_s25 = smov 4   ;;  %p221_p5 = scmp.lt.s32.totalorder %s1228_s20, 3 }
  0x20   : > { %1012 = dma.hbm_to_vmem [thread:$0]  (!%p1329_p9), %s191_s7, 1024, %s193_s9, %s180_s11, %s1231_s23, %s1232_s24, %s1233_s25  }
  0x21   : > { %s873_s29 = sshll.u32 %s1224_s19, 10  ;;  %p1346_p6 = pnand %p830_p10, %p221_p5 }
  0x22   : > { %s212_s12 = scalar_lea.hbm %s1472_s1, %s873_s29  ;;  %s206_s13 = scalar_lea.vmem [#allocation6], %s825_s30 }
  0x23   : > { %s213_s14 = sshll.u32 %s206_s13, 4  ;;  %s203_s15 = scalar_lea.sflag [#allocation7], %s1318_s28  ;;  %s214_s14 = int_to_ptr.vmem [resolvable:$true] %s213_s14 }
  0x24   : > { %s1131_s21 = scalar_lea.vmem %s214_s14, 1024  ;;  %s1234_s7 = smov [#allocation6]  }
  0x25   : > { %p1132_p8 = scmp.ne.s32.totalorder %s214_s14, %s1131_s21  ;;  %s1136_s9 = sshll.u32 %s1234_s7, 4  ;;  %s1137_s9 = int_to_ptr.vmem [resolvable:$false] %s1136_s9 }
  0x26   : > { %s1138_s11 = scalar_lea.vmem %s1137_s9, 2048  ;;  %p1139_p10 = scmp.lt.s32.totalorder %s214_s14, %s1137_s9 }
  0x27   : > { %p1134_p12 = pnand %p1132_p8, %p1092_p11  ;;  %p1140_p0 = scmp.lt.s32.totalorder %s1138_s11, %s1131_s21 }
  0x29   : > { %p1135_p13 = pneg %p1134_p12  ;;  %p1141_p1 = por %p1140_p0, %p1139_p10 }
  0x2b   : > { %p1142_p2 = pnand %p1141_p1, %p1135_p13 }
  0x2d   : > { %1145 = shalt.err (!%p1142_p2)
}
  0x2e   : > { %1015 = dma.hbm_to_vmem [thread:$0]  (!%p1329_p9), %s212_s12, 1024, %s214_s14, %s203_s15, %s1232_s24, %s1232_s24, %s1233_s25  }
  0x2f   : > { %225 = sbr.rel (%p1346_p6) target bundleno = 351 (0x15f), region = 36  ;;  %s227_s28 = sand.u32 (!%p1346_p6), 1, %s1212_s16  }
  0x30   : > { %s831_s30 = sshll.u32 (!%p1346_p6), %s227_s28, 6  ;;  %s228_s23 = scalar_lea.sflag (!%p1346_p6), [#allocation4], %s227_s28 }
  0x31   : > { %s1364_s29 = scalar_lea.vmem (!%p1346_p6), [#allocation3], %s831_s30 }
  0x34   : > { %1195 = dma.done.wait (%p1309_p7), %s228_s23, 1024  }
  0x35   : > { %1197 = vsyncadd (%p1309_p7), %s228_s23, 4294966272  ;;  %s237_s21 = scalar_lea.sflag [#allocation7], %s227_s28  ;;  %s1370_s6 = scalar_lea.vmem [#allocation6], %s831_s30 }
  0x36   : > { %1199 = dma.done.wait (%p1309_p7), %s237_s21, 1024  }
  0x37   : > { %1201 = vsyncadd (%p1309_p7), %s237_s21, 4294966272  ;;  %p833_p9 = scmp.ne.s32.totalorder %s1220_s18, 0 }
  0x39   : > { %272 = sbr.rel (%p833_p9) target bundleno = 71 (0x47), region = 48 }
  0x3e   : > { %v1235_v0 = vmov 0.0  }
  0x3f   : > { %273 = vst [vmem:[#allocation2 + $0x30] sm:$0xff] %v1235_v0  ;;  %274 = vst [vmem:[#allocation2] sm:$0xff] %v1235_v0 }
  0x40   : > { %275 = vst [vmem:[#allocation2 + $0x58] sm:$0xff] %v1235_v0  ;;  %276 = vst [vmem:[#allocation2 + $0x18] sm:$0xff] %v1235_v0 }
  0x41   : > { %277 = vst [vmem:[#allocation2 + $0x50] sm:$0xff] %v1235_v0  ;;  %278 = vst [vmem:[#allocation2 + $0x68] sm:$0xff] %v1235_v0 }
  0x42   : > { %279 = vst [vmem:[#allocation2 + $0x8] sm:$0xff] %v1235_v0  ;;  %280 = vst [vmem:[#allocation2 + $0x48] sm:$0xff] %v1235_v0 }
  0x43   : > { %281 = vst [vmem:[#allocation2 + $0x40] sm:$0xff] %v1235_v0  ;;  %282 = vst [vmem:[#allocation2 + $0x20] sm:$0xff] %v1235_v0 }
  0x44   : > { %283 = vst [vmem:[#allocation2 + $0x10] sm:$0xff] %v1235_v0  ;;  %284 = vst [vmem:[#allocation2 + $0x38] sm:$0xff] %v1235_v0 }
  0x45   : > { %285 = vst [vmem:[#allocation2 + $0x60] sm:$0xff] %v1235_v0  ;;  %286 = vst [vmem:[#allocation2 + $0x70] sm:$0xff] %v1235_v0 }
  0x46   : > { %287 = vst [vmem:[#allocation2 + $0x78] sm:$0xff] %v1235_v0  ;;  %288 = vst [vmem:[#allocation2 + $0x28] sm:$0xff] %v1235_v0 }
  0x47 PF: > { %v1074_v1 = vld [vmem:[%s1370_s6 + $0x38] sm:$0xff]   ;;  %v1075_v2 = vld [vmem:[%s1370_s6 + $0x30] sm:$0xff]   ;;  %v1076_v3 = vld [vmem:[%s1370_s6 + $0x28] sm:$0xff]   ;;  %p850_p7 = scmp.ne.s32.totalorder %s1220_s18, 1 }
  0x48   : > { %953 = vmatprep.subr.bf16.mxu0 %v1074_v1  ;;  %985 = vmatprep.subr.bf16.mxu1 %v1074_v1  ;;  %v1077_v4 = vld [vmem:[%s1370_s6 + $0x20] sm:$0xff]   ;;  %v1078_v7 = vld [vmem:[%s1370_s6 + $0x18] sm:$0xff]   ;;  %v1079_v8 = vld [vmem:[%s1370_s6 + $0x10] sm:$0xff]  }
  0x49   : > { %954 = vmatpush3.bf16.msra.mxu0 %v1074_v1  ;;  %993 = vmatpush3.bf16.msra.mxu1 %v1074_v1  ;;  %v1082_v5 = vld [vmem:[%s1364_s29] sm:$0xff]   ;;  %v1080_v9 = vld [vmem:[%s1370_s6 + $0x8] sm:$0xff]   ;;  %v1086_v13 = vld [vmem:[%s1364_s29 + $0x10] sm:$0xff]  }
  0x4a   : > { %955 = vmatprep.subr.bf16.mxu0 %v1075_v2  ;;  %986 = vmatprep.subr.bf16.mxu1 %v1075_v2  ;;  %v1083_v6 = vld [vmem:[%s1364_s29 + $0x20] sm:$0xff]   ;;  %v1084_v11 = vld [vmem:[%s1364_s29 + $0x8] sm:$0xff]   ;;  %v1087_v14 = vld [vmem:[%s1364_s29 + $0x30] sm:$0xff]  }
  0x4b   : > { %969 = vmatprep.mubr.bf16.mxu0 %v1082_v5  ;;  %977 = vmatprep.mubr.bf16.mxu1 %v1083_v6  ;;  %v1081_v10 = vld [vmem:[%s1370_s6] sm:$0xff]   ;;  %v1085_v12 = vld [vmem:[%s1364_s29 + $0x28] sm:$0xff]   ;;  %v1088_v15 = vld [vmem:[%s1364_s29 + $0x18] sm:$0xff]  }
  0x4c   : > { %v1089_v16 = vld [vmem:[%s1364_s29 + $0x38] sm:$0xff]   ;;  %v299_v18 = vld [vmem:[#allocation2 + $0x10] sm:$0xff]  ;;  %v297_v22 = vld [vmem:[#allocation2 + $0x40] sm:$0xff] }
  0x4d   : > { %956 = vmatpush3.bf16.msra.mxu0 %v1075_v2  ;;  %994 = vmatpush3.bf16.msra.mxu1 %v1075_v2  ;;  %v291_v17 = vld [vmem:[#allocation2 + $0x58] sm:$0xff]  ;;  %v289_v21 = vld [vmem:[#allocation2 + $0x30] sm:$0xff]  ;;  %v290_v33 = vld [vmem:[#allocation2] sm:$0xff] }
  0x4e   : > { %957 = vmatprep.subr.bf16.mxu0 %v1076_v3  ;;  %987 = vmatprep.subr.bf16.mxu1 %v1076_v3  ;;  %v292_v27 = vld [vmem:[#allocation2 + $0x18] sm:$0xff]  ;;  %v298_v34 = vld [vmem:[#allocation2 + $0x20] sm:$0xff]  ;;  %v295_v39 = vld [vmem:[#allocation2 + $0x8] sm:$0xff] }
  0x4f   : > { %v300_v28 = vld [vmem:[#allocation2 + $0x38] sm:$0xff]  ;;  %v293_v45 = vld [vmem:[#allocation2 + $0x50] sm:$0xff]  ;;  %v301_v46 = vld [vmem:[#allocation2 + $0x60] sm:$0xff] }
  0x50   : > { %v303_v40 = vld [vmem:[#allocation2 + $0x78] sm:$0xff]  ;;  %v296_v51 = vld [vmem:[#allocation2 + $0x48] sm:$0xff]  ;;  %v302_v58 = vld [vmem:[#allocation2 + $0x70] sm:$0xff] }
  0x51   : > { %958 = vmatpush3.bf16.msra.mxu0 %v1076_v3  ;;  %995 = vmatpush3.bf16.msra.mxu1 %v1076_v3  ;;  %v304_v52 = vld [vmem:[#allocation2 + $0x28] sm:$0xff] }
  0x52   : > { %959 = vmatprep.subr.bf16.mxu0 %v1077_v4  ;;  %988 = vmatprep.subr.bf16.mxu1 %v1077_v4  ;;  %v294_v57 = vld [vmem:[#allocation2 + $0x68] sm:$0xff] }
  0x55   : > { %960 = vmatpush3.bf16.msra.mxu0 %v1077_v4  ;;  %996 = vmatpush3.bf16.msra.mxu1 %v1077_v4 }
  0x56   : > { %961 = vmatprep.subr.bf16.mxu0 %v1078_v7  ;;  %989 = vmatprep.subr.bf16.mxu1 %v1078_v7 }
  0x59   : > { %962 = vmatpush3.bf16.msra.mxu0 %v1078_v7  ;;  %997 = vmatpush3.bf16.msra.mxu1 %v1078_v7 }
  0x5a   : > { %963 = vmatprep.subr.bf16.mxu0 %v1079_v8  ;;  %990 = vmatprep.subr.bf16.mxu1 %v1079_v8 }
  0x5d   : > { %964 = vmatpush3.bf16.msra.mxu0 %v1079_v8  ;;  %998 = vmatpush3.bf16.msra.mxu1 %v1079_v8 }
  0x5e   : > { %965 = vmatprep.subr.bf16.mxu0 %v1080_v9  ;;  %991 = vmatprep.subr.bf16.mxu1 %v1080_v9 }
  0x61   : > { %966 = vmatpush3.bf16.msra.mxu0 %v1080_v9  ;;  %999 = vmatpush3.bf16.msra.mxu1 %v1080_v9 }
  0x62   : > { %967 = vmatprep.subr.bf16.mxu0 %v1081_v10  ;;  %992 = vmatprep.subr.bf16.mxu1 %v1081_v10 }
  0x65   : > { %968 = vmatpush3.bf16.msra.mxu0 %v1081_v10  ;;  %1000 = vmatpush3.bf16.msra.mxu1 %v1081_v10 }
  0x68   : > { %970 = vmatmul.mubr.bf16.vlgmr.msra.gmra.mxu0 %v1084_v11  ;;  %978 = vmatmul.mubr.bf16.vlgmr.msra.gmra.mxu1 %v1085_v12 }
  0x69   : > { %973 = vmatprep.mubr.bf16.mxu0 %v1086_v13  ;;  %981 = vmatprep.mubr.bf16.mxu1 %v1087_v14 }
  0x70   : > { %974 = vmatmul.mubr.bf16.gmra.mxu0 %v1088_v15  ;;  %982 = vmatmul.mubr.bf16.gmra.mxu1 %v1089_v16 }
 0x128   : > { %v971_v19 = vpop.f32.mrf.mxu0  ;;  %v979_v20 = vpop.f32.mrf.mxu1 }
 0x129   : > { %v532_v23 = vadd.f32 %v971_v19, %v291_v17  ;;  %v540_v24 = vadd.f32 %v979_v20, %v299_v18 }
 0x12a   : > { %v467_v25 = vpop.f32.mrf.mxu0  ;;  %v499_v26 = vpop.f32.mrf.mxu1 }
 0x12b   : > { %548 = vst [vmem:[#allocation2 + $0x58] sm:$0xff] %v532_v23  ;;  %556 = vst [vmem:[#allocation2 + $0x10] sm:$0xff] %v540_v24  ;;  %v530_v29 = vadd.f32 %v467_v25, %v289_v21  ;;  %v538_v30 = vadd.f32 %v499_v26, %v297_v22 }
 0x12c   : > { %v972_v31 = vpop.f32.mrf.mxu0  ;;  %v980_v32 = vpop.f32.mrf.mxu1 }
 0x12d   : > { %546 = vst [vmem:[#allocation2 + $0x30] sm:$0xff] %v530_v29  ;;  %554 = vst [vmem:[#allocation2 + $0x40] sm:$0xff] %v538_v30  ;;  %v533_v35 = vadd.f32 %v972_v31, %v292_v27  ;;  %v541_v36 = vadd.f32 %v980_v32, %v300_v28 }
 0x12e   : > { %v470_v37 = vpop.f32.mrf.mxu0  ;;  %v502_v38 = vpop.f32.mrf.mxu1 }
 0x12f   : > { %549 = vst [vmem:[#allocation2 + $0x18] sm:$0xff] %v533_v35  ;;  %557 = vst [vmem:[#allocation2 + $0x38] sm:$0xff] %v541_v36  ;;  %v531_v41 = vadd.f32 %v470_v37, %v290_v33  ;;  %v539_v42 = vadd.f32 %v502_v38, %v298_v34 }
 0x130   : > { %v975_v43 = vpop.f32.mrf.mxu0  ;;  %v983_v44 = vpop.f32.mrf.mxu1 }
 0x131   : > { %547 = vst [vmem:[#allocation2] sm:$0xff] %v531_v41  ;;  %555 = vst [vmem:[#allocation2 + $0x20] sm:$0xff] %v539_v42  ;;  %v536_v47 = vadd.f32 %v975_v43, %v295_v39  ;;  %v544_v48 = vadd.f32 %v983_v44, %v303_v40 }
 0x132   : > { %v483_v49 = vpop.f32.mrf.mxu0  ;;  %v515_v50 = vpop.f32.mrf.mxu1 }
 0x133   : > { %552 = vst [vmem:[#allocation2 + $0x8] sm:$0xff] %v536_v47  ;;  %560 = vst [vmem:[#allocation2 + $0x78] sm:$0xff] %v544_v48  ;;  %v534_v53 = vadd.f32 %v483_v49, %v293_v45  ;;  %v542_v54 = vadd.f32 %v515_v50, %v301_v46 }
 0x134   : > { %v976_v55 = vpop.f32.mrf.mxu0  ;;  %v984_v56 = vpop.f32.mrf.mxu1 }
 0x135   : > { %550 = vst [vmem:[#allocation2 + $0x50] sm:$0xff] %v534_v53  ;;  %558 = vst [vmem:[#allocation2 + $0x60] sm:$0xff] %v542_v54  ;;  %v537_v59 = vadd.f32 %v976_v55, %v296_v51  ;;  %v545_v60 = vadd.f32 %v984_v56, %v304_v52  ;;  %565 = sbr.rel (%p850_p7) target bundleno = 335 (0x14f), region = 52 }
 0x136   : > { %v486_v61 = vpop.f32.mrf.mxu0  ;;  %v518_v62 = vpop.f32.mrf.mxu1 }
 0x137   : > { %553 = vst [vmem:[#allocation2 + $0x48] sm:$0xff] %v537_v59  ;;  %561 = vst [vmem:[#allocation2 + $0x28] sm:$0xff] %v545_v60  ;;  %v535_v63 = vadd.f32 %v486_v61, %v294_v57  ;;  %v543_v0 = vadd.f32 %v518_v62, %v302_v58 }
 0x139   : > { %551 = vst [vmem:[#allocation2 + $0x68] sm:$0xff] %v535_v63  ;;  %559 = vst [vmem:[#allocation2 + $0x70] sm:$0xff] %v543_v0 }
 0x13a   : > { %v566_v1 = vld [vmem:[#allocation2 + $0x30] sm:$0xff]  ;;  %v567_v2 = vld [vmem:[#allocation2] sm:$0xff]  ;;  %v568_v7 = vld [vmem:[#allocation2 + $0x58] sm:$0xff] }
 0x13b   : > { %v1397_v3 = vld [vmem:[%s1473_s2] ss:$0 sm:$0xff]  ;;  %v569_v8 = vld [vmem:[#allocation2 + $0x18] sm:$0xff]  ;;  %v572_v13 = vld [vmem:[#allocation2 + $0x8] sm:$0xff] }
 0x13c   : > { %v589_v4 = vmul.f32 %v1397_v3, %v566_v1  ;;  %v590_v5 = vmul.f32 %v1397_v3, %v567_v2  ;;  %v1404_v6 = vld [vmem:[%s1474_s3] ss:$0 sm:$0xff]  ;;  %v591_v9 = vmul.f32 %v1397_v3, %v568_v7  ;;  %v592_v10 = vmul.f32 %v1397_v3, %v569_v8  ;;  %v570_v11 = vld [vmem:[#allocation2 + $0x50] sm:$0xff]  ;;  %v577_v34 = vld [vmem:[#allocation2 + $0x38] sm:$0xff] }
 0x13d   : > { %v593_v16 = vmul.f32 %v1397_v3, %v570_v11  ;;  %v595_v21 = vmul.f32 %v1397_v3, %v572_v13  ;;  %v574_v23 = vld [vmem:[#allocation2 + $0x40] sm:$0xff]  ;;  %v576_v33 = vld [vmem:[#allocation2 + $0x10] sm:$0xff]  ;;  %v580_v45 = vld [vmem:[#allocation2 + $0x78] sm:$0xff]  ;;  %v600_v49 = vmul.f32 %v1397_v3, %v577_v34 }
 0x13e   : > { %v612_v14 = vadd.f32 %v1404_v6, %v589_v4  ;;  %v613_v15 = vadd.f32 %v1404_v6, %v590_v5  ;;  %v573_v18 = vld [vmem:[#allocation2 + $0x48] sm:$0xff]  ;;  %v614_v19 = vadd.f32 %v1404_v6, %v591_v9  ;;  %v615_v20 = vadd.f32 %v1404_v6, %v592_v10  ;;  %v575_v28 = vld [vmem:[#allocation2 + $0x20] sm:$0xff] }
 0x13f   : > { %v596_v22 = vmul.f32 %v1397_v3, %v573_v18  ;;  %v616_v26 = vadd.f32 %v1404_v6, %v593_v16  ;;  %v618_v31 = vadd.f32 %v1404_v6, %v595_v21  ;;  %v597_v38 = vmul.f32 %v1397_v3, %v574_v23  ;;  %v578_v39 = vld [vmem:[#allocation2 + $0x60] sm:$0xff]  ;;  %v581_v50 = vld [vmem:[#allocation2 + $0x28] sm:$0xff] }
 0x140   : > { %v571_v12 = vld [vmem:[#allocation2 + $0x68] sm:$0xff]  ;;  %v628_v24 = vmax.f32 %v612_v14, 0.0  ;;  %v629_v25 = vmax.f32 %v613_v15, 0.0  ;;  %v630_v29 = vmax.f32 %v614_v19, 0.0  ;;  %v631_v30 = vmax.f32 %v615_v20, 0.0  ;;  %v579_v40 = vld [vmem:[#allocation2 + $0x70] sm:$0xff] }
 0x141   : > { %v594_v17 = vmul.f32 %v1397_v3, %v571_v12  ;;  %v619_v32 = vadd.f32 %v1404_v6, %v596_v22  ;;  %v632_v36 = vmax.f32 %v616_v26, 0.0  ;;  %v634_v42 = vmax.f32 %v618_v31, 0.0 }
 0x142   : > { %v893_v35 = vpack.c.bf16 %v629_v25, %v628_v24  ;;  %v898_v41 = vpack.c.bf16 %v631_v30, %v630_v29  ;;  %v598_v44 = vmul.f32 %v1397_v3, %v575_v28  ;;  %v620_v47 = vadd.f32 %v1404_v6, %v597_v38 }
 0x143   : > { %v617_v27 = vadd.f32 %v1404_v6, %v594_v17  ;;  %v635_v43 = vmax.f32 %v619_v32, 0.0  ;;  %v599_v48 = vmul.f32 %v1397_v3, %v576_v33  ;;  %v601_v53 = vmul.f32 %v1397_v3, %v578_v39 }
 0x144   : > { %894 = vst [vmem:[#allocation8] sm:$0xff] %v893_v35   ;;  %930 = vst [vmem:[#allocation8 + $0x8] sm:$0xff] %v898_v41   ;;  %v621_v52 = vadd.f32 %v1404_v6, %v598_v44  ;;  %v602_v54 = vmul.f32 %v1397_v3, %v579_v40  ;;  %v636_v55 = vmax.f32 %v620_v47, 0.0  ;;  %v623_v57 = vadd.f32 %v1404_v6, %v600_v49 }
 0x145   : > { %v633_v37 = vmax.f32 %v617_v27, 0.0  ;;  %v908_v51 = vpack.c.bf16 %v635_v43, %v634_v42  ;;  %v622_v56 = vadd.f32 %v1404_v6, %v599_v48  ;;  %v603_v58 = vmul.f32 %v1397_v3, %v580_v45 }
 0x146   : > { %v637_v59 = vmax.f32 %v621_v52, 0.0  ;;  %v624_v60 = vadd.f32 %v1404_v6, %v601_v53  ;;  %v625_v61 = vadd.f32 %v1404_v6, %v602_v54  ;;  %v604_v62 = vmul.f32 %v1397_v3, %v581_v50 }
 0x147   : > { %v903_v46 = vpack.c.bf16 %v633_v37, %v632_v36  ;;  %932 = vst [vmem:[#allocation8 + $0x18] sm:$0xff] %v908_v51   ;;  %v638_v63 = vmax.f32 %v622_v56, 0.0  ;;  %v639_v0 = vmax.f32 %v623_v57, 0.0  ;;  %v626_v1 = vadd.f32 %v1404_v6, %v603_v58 }
 0x148   : > { %v913_v2 = vpack.c.bf16 %v637_v59, %v636_v55  ;;  %v640_v4 = vmax.f32 %v624_v60, 0.0  ;;  %v641_v5 = vmax.f32 %v625_v61, 0.0  ;;  %v627_v7 = vadd.f32 %v1404_v6, %v604_v62 }
 0x149   : > { %931 = vst [vmem:[#allocation8 + $0x10] sm:$0xff] %v903_v46   ;;  %v918_v8 = vpack.c.bf16 %v639_v0, %v638_v63  ;;  %v642_v9 = vmax.f32 %v626_v1, 0.0 }
 0x14a   : > { %933 = vst [vmem:[#allocation8 + $0x20] sm:$0xff] %v913_v2   ;;  %v923_v10 = vpack.c.bf16 %v641_v5, %v640_v4  ;;  %v643_v11 = vmax.f32 %v627_v7, 0.0 }
 0x14b   : > { %934 = vst [vmem:[#allocation8 + $0x28] sm:$0xff] %v918_v8  }
 0x14c   : > { %935 = vst [vmem:[#allocation8 + $0x30] sm:$0xff] %v923_v10   ;;  %v928_v12 = vpack.c.bf16 %v643_v11, %v642_v9 }
 0x14e   : > { %936 = vst [vmem:[#allocation8 + $0x38] sm:$0xff] %v928_v12  }
 0x14f PF: > { %s1481_s18 = sadd.s32 4294967295, %s1228_s20   ;;  %s1236_s8 = smov [#allocation8]  }
 0x150   : > { %p1438_p11 = scmp.eq.s32.totalorder %s1481_s18, 1  ;;  %s733_s12 = sshll.u32 %s1236_s8, 4  ;;  %s734_s12 = int_to_ptr.vmem [resolvable:$true] %s733_s12 }
 0x151   : > { %s1146_s13 = scalar_lea.vmem %s734_s12, 1024  ;;  %p1153_p6 = scmp.lt.s32.totalorder %s734_s12, %s734_s12 }
 0x152   : > { %p1147_p3 = scmp.ne.s32.totalorder %s734_s12, %s1146_s13  ;;  %p1154_p8 = scmp.lt.s32.totalorder %s1146_s13, %s1146_s13 }
 0x154   : > { %p1148_p4 = pnand %p1147_p3, %p1438_p11  ;;  %p1155_p12 = por %p1154_p8, %p1153_p6 }
 0x156   : > { %p1149_p5 = pneg %p1148_p4 }
 0x158   : > { %p1156_p13 = pnand %p1155_p12, %p1149_p5 }
 0x15a   : > { %1159 = shalt.err (!%p1156_p13)
}
 0x15b   : > { %s1237_s14 = smov 64   ;;  %s1238_s15 = smov 4  }
 0x15c   : > { %1006 = dma.vmem_to_hbm [thread:$0]  (%p1438_p11), %s734_s12, 1024, %s1475_s4, [#allocation5], %s1237_s14, %s1237_s14, %s1238_s15  }
 0x15d   : > { %1203 = dma.done.wait (%p1438_p11), [#allocation5], 1024  }
 0x15e   : > { %1205 = vsyncadd (%p1438_p11), [#allocation5], 4294966272 }
 0x15f PF: > { %s21_s20 = sadd.s32 1, %s1228_s20   ;;  %s1483_s15 = smov %s1212_s16 }
 0x160   : > { %p18_p10 = scmp.ge.s32.totalorder %s21_s20, 4   ;;  %s1484_s16 = smov %s1216_s17 }
 0x161   : > { %s1485_s17 = smov %s1315_s27  ;;  %s1486_s18 = smov %s1224_s19 }
 0x162   : > { %s1487_s19 = smov %s1489_s22  ;;  %20 = sbr.rel (!%p18_p10) target bundleno = 7 (0x7), region = 95 }
 0x167   :  { %749 = vsyncpa [#allocation4], 1 }
 0x168   :  { %751 = vsyncpa [#allocation4 + $0x1], 1 }
 0x169   :  { %752 = vsyncpa [#allocation7], 1 }
 0x16a   :  { %754 = vsyncpa [#allocation7 + $0x1], 1 }
 0x16b   :  { %755 = vsyncpa [#allocation5], 1 }
 0x16c   :  { %757 = vsyncpa [#allocation5 + $0x1], 1 }

</bundles_post_ra>
